<compile_context>
chip_gen: v5e
topology: v5e:2x2
jax: 0.10.0
libtpu: 0.0.40
codegen_flags: <defaults>
</compile_context>

<pallas_src>
import functools

import jax
import jax.numpy as jnp
from jax.experimental import pallas as pl
from jax.experimental.pallas import tpu as pltpu


def _vae_kernel(
    x_ref, eps_ref,
    w1_ref, b1_ref, w2_ref, b2_ref,
    wmulv_ref, bmulv_ref,
    wd1_ref, bd1_ref, wd2_ref, bd2_ref, wd3_ref, bd3_ref,
    recon_ref, mulv_ref,
    *, latent_dim, compute_dtype,
):
    def mm(a_f32, w_ref):
        # bf16 (or compute_dtype) operands on the MXU, f32 accumulation.
        return jnp.dot(a_f32.astype(compute_dtype), w_ref[...],
                       preferred_element_type=jnp.float32)

    x = x_ref[...]                                    # [tb, input_dim] f32

    # ---- encoder: Linear -> ReLU -> Linear -> ReLU -------------------------
    h = jnp.maximum(mm(x, w1_ref) + b1_ref[...], 0.0)
    h = jnp.maximum(mm(h, w2_ref) + b2_ref[...], 0.0)  # [tb, hidden_dim] f32

    # ---- fused latent heads: one matmul -> [tb, 2*latent] ------------------
    mulv = mm(h, wmulv_ref) + bmulv_ref[...]
    mu = mulv[:, :latent_dim]
    logvar = mulv[:, latent_dim:]

    # ---- reparameterize: z = mu + eps * exp(0.5 * logvar) (f32) ------------
    std = jnp.exp(0.5 * logvar)
    z = mu + eps_ref[...] * std                        # [tb, latent_dim]

    # ---- decoder: Linear -> ReLU -> Linear -> ReLU -> Linear ---------------
    d = jnp.maximum(mm(z, wd1_ref) + bd1_ref[...], 0.0)
    d = jnp.maximum(mm(d, wd2_ref) + bd2_ref[...], 0.0)
    recon = mm(d, wd3_ref) + bd3_ref[...]

    recon_ref[...] = recon
    mulv_ref[...] = mulv                               # packed (mu | logvar)


def _choose_block_b(B, target_programs):
    """Largest batch tile (multiple of 8 f32 sublanes, divisor of B) that still
    yields >= target_programs grid steps. target_programs=1 => full batch."""
    if target_programs <= 1 or B < 16:
        return B
    cand = max(8, (B // target_programs) // 8 * 8)
    while cand > 0 and B % cand != 0:
        cand -= 8
    return cand if cand > 0 else B


def vae_forward(x, eps, packed, *, block_b=None, target_programs=1,
                compute_dtype=jnp.bfloat16):
    """Fused VAE forward.

    x:      [B, input_dim] f32
    eps:    [B, latent_dim] f32 reparameterization noise
    packed: dict from `pack_params` (bf16 weights [in,out], f32 biases [1,out],
            mu/logvar head fused into wmulv/bmulv).
    target_programs: set to 2 on v7x so both TensorCores get work; 1 (default)
            gives the single largest tile, best on v5e/v6e.
    Returns (reconstructed_x, mu, logvar), all f32.
    """
    B, input_dim = x.shape
    latent_dim = eps.shape[1]

    if block_b is None:
        block_b = _choose_block_b(B, target_programs)
    assert B % block_b == 0
    assert block_b == B or block_b % 8 == 0, "block_b must be a multiple of 8"
    grid = (B // block_b,)

    def row_spec(cols):
        return pl.BlockSpec((block_b, cols), lambda i: (i, 0))

    def full_spec(arr):
        # Whole-array block, constant block index -> resident across the grid.
        return pl.BlockSpec(arr.shape, lambda i: (0, 0))

    in_specs = [
        row_spec(input_dim),                         # x
        row_spec(latent_dim),                        # eps
        full_spec(packed["w1"]), full_spec(packed["b1"]),
        full_spec(packed["w2"]), full_spec(packed["b2"]),
        full_spec(packed["wmulv"]), full_spec(packed["bmulv"]),
        full_spec(packed["wd1"]), full_spec(packed["bd1"]),
        full_spec(packed["wd2"]), full_spec(packed["bd2"]),
        full_spec(packed["wd3"]), full_spec(packed["bd3"]),
    ]
    out_specs = [
        row_spec(input_dim),                         # reconstructed x
        row_spec(2 * latent_dim),                    # packed (mu | logvar)
    ]
    out_shape = (
        jax.ShapeDtypeStruct((B, input_dim), jnp.float32),
        jax.ShapeDtypeStruct((B, 2 * latent_dim), jnp.float32),
    )

    kernel = functools.partial(
        _vae_kernel, latent_dim=latent_dim, compute_dtype=compute_dtype)

    call = pl.pallas_call(
        kernel,
        out_shape=out_shape,
        grid_spec=pltpu.PrefetchScalarGridSpec(
            num_scalar_prefetch=0,
            grid=grid,
            in_specs=in_specs,
            out_specs=out_specs,
        ),
        compiler_params=pltpu.CompilerParams(
            dimension_semantics=("parallel",),
            vmem_limit_bytes=48 * 1024 * 1024,
        ),
    )

    recon, mulv = call(
        x, eps,
        packed["w1"], packed["b1"], packed["w2"], packed["b2"],
        packed["wmulv"], packed["bmulv"],
        packed["wd1"], packed["bd1"], packed["wd2"], packed["bd2"],
        packed["wd3"], packed["bd3"],
    )
    mu = mulv[:, :latent_dim]
    logvar = mulv[:, latent_dim:]
    return recon, mu, logvar


def init_params(key, input_dim, hidden_dim, latent_dim):
    """Deterministic synthetic init. Weights stored as [in, out] (pre-transposed), f32."""
    def linear(k, fan_in, fan_out):
        kw, kb = jax.random.split(k)
        bound = 1.0 / jnp.sqrt(fan_in)
        w = jax.random.uniform(kw, (fan_in, fan_out), jnp.float32, -bound, bound)
        b = jax.random.uniform(kb, (1, fan_out), jnp.float32, -bound, bound)
        return w, b

    keys = jax.random.split(key, 7)
    p = {}
    p["w1"], p["b1"] = linear(keys[0], input_dim, hidden_dim)
    p["w2"], p["b2"] = linear(keys[1], hidden_dim, hidden_dim)
    p["wmu"], p["bmu"] = linear(keys[2], hidden_dim, latent_dim)
    p["wlv"], p["blv"] = linear(keys[3], hidden_dim, latent_dim)
    p["wd1"], p["bd1"] = linear(keys[4], latent_dim, hidden_dim)
    p["wd2"], p["bd2"] = linear(keys[5], hidden_dim, hidden_dim)
    p["wd3"], p["bd3"] = linear(keys[6], hidden_dim, input_dim)
    return p


def pack_params(p, compute_dtype=jnp.bfloat16):
    """One-time prep: cast weights to the MXU compute dtype and fuse the
    mu/logvar heads into a single [hidden, 2*latent] matmul. Biases stay f32."""
    cd = compute_dtype
    return {
        "w1": p["w1"].astype(cd), "b1": p["b1"],
        "w2": p["w2"].astype(cd), "b2": p["b2"],
        "wmulv": jnp.concatenate([p["wmu"], p["wlv"]], axis=1).astype(cd),
        "bmulv": jnp.concatenate([p["bmu"], p["blv"]], axis=1),
        "wd1": p["wd1"].astype(cd), "bd1": p["bd1"],
        "wd2": p["wd2"].astype(cd), "bd2": p["bd2"],
        "wd3": p["wd3"].astype(cd), "bd3": p["bd3"],
    }


def vae_forward_ref(x, eps, p, compute_dtype=jnp.bfloat16):
    """Pure-JAX reference mirroring the kernel's bf16-operand / f32-accumulate math."""
    cd = compute_dtype

    def mm(a, w):
        return jnp.dot(a.astype(cd), w.astype(cd),
                       preferred_element_type=jnp.float32)

    h = jnp.maximum(mm(x, p["w1"]) + p["b1"], 0.0)
    h = jnp.maximum(mm(h, p["w2"]) + p["b2"], 0.0)
    mu = mm(h, p["wmu"]) + p["bmu"]
    logvar = mm(h, p["wlv"]) + p["blv"]
    z = mu + eps * jnp.exp(0.5 * logvar)
    d = jnp.maximum(mm(z, p["wd1"]) + p["bd1"], 0.0)
    d = jnp.maximum(mm(d, p["wd2"]) + p["bd2"], 0.0)
    recon = mm(d, p["wd3"]) + p["bd3"]
    return recon, mu, logvar


def vae_loss(reconstructed_x, x, mu, logvar, beta=100.0):
    """JAX port of the PyTorch vae_loss (plain-JAX glue, not the hot path)."""
    recon_loss = jnp.mean((reconstructed_x - x) ** 2)
    kl_div = jnp.mean(
        -0.5 * jnp.sum(1.0 + logvar - mu ** 2 - jnp.exp(logvar), axis=1)
    )
    total_loss = beta * recon_loss + kl_div
    return total_loss, recon_loss, kl_div


if __name__ == "__main__":
    # NOTE: at these demo sizes the whole forward is ~100 KFLOP; the kernel is
    # launch/DMA-overhead bound regardless of tiling. The structure below is
    # what pays off at realistic (hundreds-wide) dims.
    input_dim, hidden_dim, latent_dim = 16, 32, 8
    batch = 16

    key = jax.random.PRNGKey(0)
    k_params, k_x, k_eps = jax.random.split(key, 3)

    params = init_params(k_params, input_dim, hidden_dim, latent_dim)
    packed = pack_params(params)                     # one-time bf16 cast + head fusion

    x = jax.random.normal(k_x, (batch, input_dim), jnp.float32)
    # reparameterization noise (torch.randn_like(std)); generated outside the
    # kernel for determinism, consumed inside the kernel.
    # TODO(synk): could generate eps in-kernel via pltpu.prng_seed/prng_random_bits
    # to drop one DMA stream, at the cost of ref-verifiability.
    eps = jax.random.normal(k_eps, (batch, latent_dim), jnp.float32)

    # grid=1 (full-batch tile) on v5e/v6e; pass target_programs=2 on v7x.
    recon, mu, logvar = vae_forward(x, eps, packed)
    jax.block_until_ready((recon, mu, logvar))

    # verify against pure-JAX reference (same bf16-operand / f32-accum math)
    r_ref, mu_ref, lv_ref = vae_forward_ref(x, eps, params)
    assert jnp.allclose(recon, r_ref, atol=2e-4, rtol=2e-4)
    assert jnp.allclose(mu, mu_ref, atol=2e-4, rtol=2e-4)
    assert jnp.allclose(logvar, lv_ref, atol=2e-4, rtol=2e-4)

    # exercise the loss glue too
    total, rl, kl = vae_loss(recon, x, mu, logvar, beta=100.0)
    jax.block_until_ready(total)

    print("KERNEL_OK")
</pallas_src>

<mosaic_0001>
module attributes {stable_mosaic.version = 11 : i64} {
  func.func @_vae_kernel(%arg0: i32, %arg1: memref<16x16xf32, #tpu.memory_space<vmem>>, %arg2: memref<16x8xf32, #tpu.memory_space<vmem>>, %arg3: memref<16x32xbf16, #tpu.memory_space<vmem>>, %arg4: memref<1x32xf32, #tpu.memory_space<vmem>>, %arg5: memref<32x32xbf16, #tpu.memory_space<vmem>>, %arg6: memref<1x32xf32, #tpu.memory_space<vmem>>, %arg7: memref<32x16xbf16, #tpu.memory_space<vmem>>, %arg8: memref<1x16xf32, #tpu.memory_space<vmem>>, %arg9: memref<8x32xbf16, #tpu.memory_space<vmem>>, %arg10: memref<1x32xf32, #tpu.memory_space<vmem>>, %arg11: memref<32x32xbf16, #tpu.memory_space<vmem>>, %arg12: memref<1x32xf32, #tpu.memory_space<vmem>>, %arg13: memref<32x16xbf16, #tpu.memory_space<vmem>>, %arg14: memref<1x16xf32, #tpu.memory_space<vmem>>, %arg15: memref<16x16xf32, #tpu.memory_space<vmem>>, %arg16: memref<16x16xf32, #tpu.memory_space<vmem>>) attributes {dimension_semantics = [#tpu.dimension_semantics<parallel>], iteration_bounds = array<i64: 1>, scalar_prefetch = 0 : i64, scratch_operands = 0 : i64, tpu.core_type = #tpu.core_type<tc>, window_params = [{transform_indices = @transform_0, window_bounds = array<i64: 16, 16>}, {transform_indices = @transform_1, window_bounds = array<i64: 16, 8>}, {pipeline_mode = #tpu.pipeline_mode<synchronous>, transform_indices = @transform_2, window_bounds = array<i64: 16, 32>}, {pipeline_mode = #tpu.pipeline_mode<synchronous>, transform_indices = @transform_3, window_bounds = array<i64: 1, 32>}, {pipeline_mode = #tpu.pipeline_mode<synchronous>, transform_indices = @transform_4, window_bounds = array<i64: 32, 32>}, {pipeline_mode = #tpu.pipeline_mode<synchronous>, transform_indices = @transform_5, window_bounds = array<i64: 1, 32>}, {pipeline_mode = #tpu.pipeline_mode<synchronous>, transform_indices = @transform_6, window_bounds = array<i64: 32, 16>}, {pipeline_mode = #tpu.pipeline_mode<synchronous>, transform_indices = @transform_7, window_bounds = array<i64: 1, 16>}, {pipeline_mode = #tpu.pipeline_mode<synchronous>, transform_indices = @transform_8, window_bounds = array<i64: 8, 32>}, {pipeline_mode = #tpu.pipeline_mode<synchronous>, transform_indices = @transform_9, window_bounds = array<i64: 1, 32>}, {pipeline_mode = #tpu.pipeline_mode<synchronous>, transform_indices = @transform_10, window_bounds = array<i64: 32, 32>}, {pipeline_mode = #tpu.pipeline_mode<synchronous>, transform_indices = @transform_11, window_bounds = array<i64: 1, 32>}, {pipeline_mode = #tpu.pipeline_mode<synchronous>, transform_indices = @transform_12, window_bounds = array<i64: 32, 16>}, {pipeline_mode = #tpu.pipeline_mode<synchronous>, transform_indices = @transform_13, window_bounds = array<i64: 1, 16>}, {transform_indices = @transform_14, window_bounds = array<i64: 16, 16>}, {transform_indices = @transform_15, window_bounds = array<i64: 16, 16>}]} {
    %c0 = arith.constant 0 : index
    %c0_0 = arith.constant 0 : index
    %0 = vector.load %arg1[%c0, %c0_0] : memref<16x16xf32, #tpu.memory_space<vmem>>, vector<16x16xf32>
    %1 = arith.truncf %0 : vector<16x16xf32> to vector<16x16xbf16>
    %c0_1 = arith.constant 0 : index
    %c0_2 = arith.constant 0 : index
    %2 = vector.load %arg3[%c0_1, %c0_2] : memref<16x32xbf16, #tpu.memory_space<vmem>>, vector<16x32xbf16>
    %cst = arith.constant dense<0.000000e+00> : vector<16x32xf32>
    %3 = tpu.matmul %1, %2, %cst {dimension_numbers = #tpu.dot_dimension_numbers<[1], [0], [0], [1], [0, 0, 1, 1], [], []>} : vector<16x16xbf16>, vector<16x32xbf16>, vector<16x32xf32> -> vector<16x32xf32>
    %c0_3 = arith.constant 0 : index
    %c0_4 = arith.constant 0 : index
    %4 = vector.load %arg4[%c0_3, %c0_4] : memref<1x32xf32, #tpu.memory_space<vmem>>, vector<1x32xf32>
    %5 = vector.broadcast %4 : vector<1x32xf32> to vector<16x32xf32>
    %6 = arith.addf %3, %5 : vector<16x32xf32>
    %cst_5 = arith.constant 0.000000e+00 : f32
    %7 = vector.broadcast %cst_5 : f32 to vector<16x32xf32>
    %8 = arith.maximumf %6, %7 : vector<16x32xf32>
    %9 = arith.truncf %8 : vector<16x32xf32> to vector<16x32xbf16>
    %c0_6 = arith.constant 0 : index
    %c0_7 = arith.constant 0 : index
    %10 = vector.load %arg5[%c0_6, %c0_7] : memref<32x32xbf16, #tpu.memory_space<vmem>>, vector<32x32xbf16>
    %cst_8 = arith.constant dense<0.000000e+00> : vector<16x32xf32>
    %11 = tpu.matmul %9, %10, %cst_8 {dimension_numbers = #tpu.dot_dimension_numbers<[1], [0], [0], [1], [0, 0, 1, 1], [], []>} : vector<16x32xbf16>, vector<32x32xbf16>, vector<16x32xf32> -> vector<16x32xf32>
    %c0_9 = arith.constant 0 : index
    %c0_10 = arith.constant 0 : index
    %12 = vector.load %arg6[%c0_9, %c0_10] : memref<1x32xf32, #tpu.memory_space<vmem>>, vector<1x32xf32>
    %13 = vector.broadcast %12 : vector<1x32xf32> to vector<16x32xf32>
    %14 = arith.addf %11, %13 : vector<16x32xf32>
    %cst_11 = arith.constant 0.000000e+00 : f32
    %15 = vector.broadcast %cst_11 : f32 to vector<16x32xf32>
    %16 = arith.maximumf %14, %15 : vector<16x32xf32>
    %17 = arith.truncf %16 : vector<16x32xf32> to vector<16x32xbf16>
    %c0_12 = arith.constant 0 : index
    %c0_13 = arith.constant 0 : index
    %18 = vector.load %arg7[%c0_12, %c0_13] : memref<32x16xbf16, #tpu.memory_space<vmem>>, vector<32x16xbf16>
    %cst_14 = arith.constant dense<0.000000e+00> : vector<16x16xf32>
    %19 = tpu.matmul %17, %18, %cst_14 {dimension_numbers = #tpu.dot_dimension_numbers<[1], [0], [0], [1], [0, 0, 1, 1], [], []>} : vector<16x32xbf16>, vector<32x16xbf16>, vector<16x16xf32> -> vector<16x16xf32>
    %c0_15 = arith.constant 0 : index
    %c0_16 = arith.constant 0 : index
    %20 = vector.load %arg8[%c0_15, %c0_16] : memref<1x16xf32, #tpu.memory_space<vmem>>, vector<1x16xf32>
    %21 = vector.broadcast %20 : vector<1x16xf32> to vector<16x16xf32>
    %22 = arith.addf %19, %21 : vector<16x16xf32>
    %23 = vector.extract_strided_slice %22 {offsets = [0, 0], sizes = [16, 8], strides = [1, 1]} : vector<16x16xf32> to vector<16x8xf32>
    %24 = vector.extract_strided_slice %22 {offsets = [0, 8], sizes = [16, 8], strides = [1, 1]} : vector<16x16xf32> to vector<16x8xf32>
    %cst_17 = arith.constant 5.000000e-01 : f32
    %25 = vector.broadcast %cst_17 : f32 to vector<16x8xf32>
    %26 = arith.mulf %25, %24 : vector<16x8xf32>
    %27 = math.exp %26 : vector<16x8xf32>
    %c0_18 = arith.constant 0 : index
    %c0_19 = arith.constant 0 : index
    %28 = vector.load %arg2[%c0_18, %c0_19] : memref<16x8xf32, #tpu.memory_space<vmem>>, vector<16x8xf32>
    %29 = arith.mulf %28, %27 : vector<16x8xf32>
    %30 = arith.addf %23, %29 : vector<16x8xf32>
    %31 = arith.truncf %30 : vector<16x8xf32> to vector<16x8xbf16>
    %c0_20 = arith.constant 0 : index
    %c0_21 = arith.constant 0 : index
    %32 = vector.load %arg9[%c0_20, %c0_21] : memref<8x32xbf16, #tpu.memory_space<vmem>>, vector<8x32xbf16>
    %cst_22 = arith.constant dense<0.000000e+00> : vector<16x32xf32>
    %33 = tpu.matmul %31, %32, %cst_22 {dimension_numbers = #tpu.dot_dimension_numbers<[1], [0], [0], [1], [0, 0, 1, 1], [], []>} : vector<16x8xbf16>, vector<8x32xbf16>, vector<16x32xf32> -> vector<16x32xf32>
    %c0_23 = arith.constant 0 : index
    %c0_24 = arith.constant 0 : index
    %34 = vector.load %arg10[%c0_23, %c0_24] : memref<1x32xf32, #tpu.memory_space<vmem>>, vector<1x32xf32>
    %35 = vector.broadcast %34 : vector<1x32xf32> to vector<16x32xf32>
    %36 = arith.addf %33, %35 : vector<16x32xf32>
    %cst_25 = arith.constant 0.000000e+00 : f32
    %37 = vector.broadcast %cst_25 : f32 to vector<16x32xf32>
    %38 = arith.maximumf %36, %37 : vector<16x32xf32>
    %39 = arith.truncf %38 : vector<16x32xf32> to vector<16x32xbf16>
    %c0_26 = arith.constant 0 : index
    %c0_27 = arith.constant 0 : index
    %40 = vector.load %arg11[%c0_26, %c0_27] : memref<32x32xbf16, #tpu.memory_space<vmem>>, vector<32x32xbf16>
    %cst_28 = arith.constant dense<0.000000e+00> : vector<16x32xf32>
    %41 = tpu.matmul %39, %40, %cst_28 {dimension_numbers = #tpu.dot_dimension_numbers<[1], [0], [0], [1], [0, 0, 1, 1], [], []>} : vector<16x32xbf16>, vector<32x32xbf16>, vector<16x32xf32> -> vector<16x32xf32>
    %c0_29 = arith.constant 0 : index
    %c0_30 = arith.constant 0 : index
    %42 = vector.load %arg12[%c0_29, %c0_30] : memref<1x32xf32, #tpu.memory_space<vmem>>, vector<1x32xf32>
    %43 = vector.broadcast %42 : vector<1x32xf32> to vector<16x32xf32>
    %44 = arith.addf %41, %43 : vector<16x32xf32>
    %cst_31 = arith.constant 0.000000e+00 : f32
    %45 = vector.broadcast %cst_31 : f32 to vector<16x32xf32>
    %46 = arith.maximumf %44, %45 : vector<16x32xf32>
    %47 = arith.truncf %46 : vector<16x32xf32> to vector<16x32xbf16>
    %c0_32 = arith.constant 0 : index
    %c0_33 = arith.constant 0 : index
    %48 = vector.load %arg13[%c0_32, %c0_33] : memref<32x16xbf16, #tpu.memory_space<vmem>>, vector<32x16xbf16>
    %cst_34 = arith.constant dense<0.000000e+00> : vector<16x16xf32>
    %49 = tpu.matmul %47, %48, %cst_34 {dimension_numbers = #tpu.dot_dimension_numbers<[1], [0], [0], [1], [0, 0, 1, 1], [], []>} : vector<16x32xbf16>, vector<32x16xbf16>, vector<16x16xf32> -> vector<16x16xf32>
    %c0_35 = arith.constant 0 : index
    %c0_36 = arith.constant 0 : index
    %50 = vector.load %arg14[%c0_35, %c0_36] : memref<1x16xf32, #tpu.memory_space<vmem>>, vector<1x16xf32>
    %51 = vector.broadcast %50 : vector<1x16xf32> to vector<16x16xf32>
    %52 = arith.addf %49, %51 : vector<16x16xf32>
    %c0_37 = arith.constant 0 : index
    %c0_38 = arith.constant 0 : index
    %53 = vector.load %arg15[%c0_37, %c0_38] : memref<16x16xf32, #tpu.memory_space<vmem>>, vector<16x16xf32>
    tpu.vector_store %arg15[%c0_37, %c0_38], %52 {strides = array<i32>} : memref<16x16xf32, #tpu.memory_space<vmem>>, vector<16x16xf32>,
    %c0_39 = arith.constant 0 : index
    %c0_40 = arith.constant 0 : index
    %54 = vector.load %arg16[%c0_39, %c0_40] : memref<16x16xf32, #tpu.memory_space<vmem>>, vector<16x16xf32>
    tpu.vector_store %arg16[%c0_39, %c0_40], %22 {strides = array<i32>} : memref<16x16xf32, #tpu.memory_space<vmem>>, vector<16x16xf32>,
    return
  }
  func.func @transform_0(%arg0: i32) -> (i32, i32) {
    %c0_i32 = arith.constant 0 : i32
    %c0_i32_0 = arith.constant 0 : i32
    return %arg0, %c0_i32 : i32, i32
  }
  func.func @transform_1(%arg0: i32) -> (i32, i32) {
    %c0_i32 = arith.constant 0 : i32
    %c0_i32_0 = arith.constant 0 : i32
    return %arg0, %c0_i32 : i32, i32
  }
  func.func @transform_2(%arg0: i32) -> (i32, i32) {
    %c0_i32 = arith.constant 0 : i32
    %c0_i32_0 = arith.constant 0 : i32
    %c0_i32_1 = arith.constant 0 : i32
    return %c0_i32, %c0_i32_0 : i32, i32
  }
  func.func @transform_3(%arg0: i32) -> (i32, i32) {
    %c0_i32 = arith.constant 0 : i32
    %c0_i32_0 = arith.constant 0 : i32
    %c0_i32_1 = arith.constant 0 : i32
    return %c0_i32, %c0_i32_0 : i32, i32
  }
  func.func @transform_4(%arg0: i32) -> (i32, i32) {
    %c0_i32 = arith.constant 0 : i32
    %c0_i32_0 = arith.constant 0 : i32
    %c0_i32_1 = arith.constant 0 : i32
    return %c0_i32, %c0_i32_0 : i32, i32
  }
  func.func @transform_5(%arg0: i32) -> (i32, i32) {
    %c0_i32 = arith.constant 0 : i32
    %c0_i32_0 = arith.constant 0 : i32
    %c0_i32_1 = arith.constant 0 : i32
    return %c0_i32, %c0_i32_0 : i32, i32
  }
  func.func @transform_6(%arg0: i32) -> (i32, i32) {
    %c0_i32 = arith.constant 0 : i32
    %c0_i32_0 = arith.constant 0 : i32
    %c0_i32_1 = arith.constant 0 : i32
    return %c0_i32, %c0_i32_0 : i32, i32
  }
  func.func @transform_7(%arg0: i32) -> (i32, i32) {
    %c0_i32 = arith.constant 0 : i32
    %c0_i32_0 = arith.constant 0 : i32
    %c0_i32_1 = arith.constant 0 : i32
    return %c0_i32, %c0_i32_0 : i32, i32
  }
  func.func @transform_8(%arg0: i32) -> (i32, i32) {
    %c0_i32 = arith.constant 0 : i32
    %c0_i32_0 = arith.constant 0 : i32
    %c0_i32_1 = arith.constant 0 : i32
    return %c0_i32, %c0_i32_0 : i32, i32
  }
  func.func @transform_9(%arg0: i32) -> (i32, i32) {
    %c0_i32 = arith.constant 0 : i32
    %c0_i32_0 = arith.constant 0 : i32
    %c0_i32_1 = arith.constant 0 : i32
    return %c0_i32, %c0_i32_0 : i32, i32
  }
  func.func @transform_10(%arg0: i32) -> (i32, i32) {
    %c0_i32 = arith.constant 0 : i32
    %c0_i32_0 = arith.constant 0 : i32
    %c0_i32_1 = arith.constant 0 : i32
    return %c0_i32, %c0_i32_0 : i32, i32
  }
  func.func @transform_11(%arg0: i32) -> (i32, i32) {
    %c0_i32 = arith.constant 0 : i32
    %c0_i32_0 = arith.constant 0 : i32
    %c0_i32_1 = arith.constant 0 : i32
    return %c0_i32, %c0_i32_0 : i32, i32
  }
  func.func @transform_12(%arg0: i32) -> (i32, i32) {
    %c0_i32 = arith.constant 0 : i32
    %c0_i32_0 = arith.constant 0 : i32
    %c0_i32_1 = arith.constant 0 : i32
    return %c0_i32, %c0_i32_0 : i32, i32
  }
  func.func @transform_13(%arg0: i32) -> (i32, i32) {
    %c0_i32 = arith.constant 0 : i32
    %c0_i32_0 = arith.constant 0 : i32
    %c0_i32_1 = arith.constant 0 : i32
    return %c0_i32, %c0_i32_0 : i32, i32
  }
  func.func @transform_14(%arg0: i32) -> (i32, i32) {
    %c0_i32 = arith.constant 0 : i32
    %c0_i32_0 = arith.constant 0 : i32
    return %arg0, %c0_i32 : i32, i32
  }
  func.func @transform_15(%arg0: i32) -> (i32, i32) {
    %c0_i32 = arith.constant 0 : i32
    %c0_i32_0 = arith.constant 0 : i32
    return %arg0, %c0_i32 : i32, i32
  }
}

</mosaic_0001>

<bundles_post_ra>
// kernel: tpu_custom_call.1
= control target key start
LH: loop header
LB: loop body
LE: loop exit
PB: predicated region body
PF: predicated region fallthrough
CT: control target
= control target key end

     0   :  { %21 = vsyncpa [#allocation3], 0  ;;  %s698_s0 = inlined_call_operand.vmem [shape: f32[16,16], index: 0, kind: input, shape index: {}]   ;;  %s699_s1 = inlined_call_operand.vmem [shape: f32[16,8], index: 1, kind: input, shape index: {}]   ;;  %s700_s2 = inlined_call_operand.vmem [shape: bf16[16,32], index: 2, kind: input, shape index: {}]   ;;  %s701_s3 = inlined_call_operand.hbm [shape: f32[1,32], index: 3, kind: input, shape index: {}]   ;;  %s702_s4 = inlined_call_operand.vmem [shape: bf16[32,32], index: 4, kind: input, shape index: {}]   ;;  %s703_s5 = inlined_call_operand.hbm [shape: f32[1,32], index: 5, kind: input, shape index: {}]   ;;  %s704_s6 = inlined_call_operand.vmem [shape: bf16[32,16], index: 6, kind: input, shape index: {}]   ;;  %s705_s7 = inlined_call_operand.vmem [shape: f32[1,16], index: 7, kind: input, shape index: {}]   ;;  %s706_s8 = inlined_call_operand.vmem [shape: bf16[8,32], index: 8, kind: input, shape index: {}]   ;;  %s707_s9 = inlined_call_operand.vmem [shape: f32[1,32], index: 9, kind: input, shape index: {}]   ;;  %s708_s10 = inlined_call_operand.vmem [shape: bf16[32,32], index: 10, kind: input, shape index: {}]   ;;  %s709_s11 = inlined_call_operand.vmem [shape: f32[1,32], index: 11, kind: input, shape index: {}]   ;;  %s710_s12 = inlined_call_operand.vmem [shape: bf16[32,16], index: 12, kind: input, shape index: {}]   ;;  %s711_s13 = inlined_call_operand.vmem [shape: f32[1,16], index: 13, kind: input, shape index: {}]   ;;  %s712_s14 = inlined_call_operand.hbm [shape: f32[16,16], index: 14, kind: output, shape index: {0}]   ;;  %s713_s15 = inlined_call_operand.hbm [shape: f32[16,16], index: 15, kind: output, shape index: {1}]  }
   0x1   :  { %22 = vsyncpa [#allocation6], 0 }
   0x2   :  { %23 = vsyncpa [#allocation4], 0 }
   0x3   :  { %24 = vsyncpa [#allocation9], 0  ;;  %s36_s20 = sshll.u32 %s701_s3, 4  ;;  %s536_s21 = smov [#allocation2]   ;;  %s37_s20 = int_to_ptr.hbm [resolvable:$true] %s36_s20 }
   0x4   :  { %s38_s22 = sshll.u32 %s536_s21, 4  ;;  %s49_s25 = sshll.u32 %s703_s5, 4  ;;  %s39_s22 = int_to_ptr.vmem [resolvable:$true] %s38_s22  ;;  %s50_s25 = int_to_ptr.hbm [resolvable:$true] %s49_s25 }
   0x5   :  { %41 = dma.hbm_to_vmem [thread:$0]  %s37_s20, 16, %s39_s22, [#allocation3]  }
   0x6   :  { %s537_s26 = smov [#allocation5]  }
   0x7   :  { %s51_s27 = sshll.u32 %s537_s26, 4  ;;  %s52_s27 = int_to_ptr.vmem [resolvable:$true] %s51_s27 }
   0x8   :  { %54 = dma.hbm_to_vmem [thread:$0]  %s50_s25, 16, %s52_s27, [#allocation6]  }
   0x9   :  { %528 = dma.done.wait [#allocation3], 16  }
   0xa   :  { %529 = vsyncadd [#allocation3], 4294967280 }
   0xb   :  { %530 = dma.done.wait [#allocation6], 16  }
   0xc   :  { %531 = vsyncadd [#allocation6], 4294967280  ;;  %v406_v0 = vld [vmem:[%s700_s2] sm:$0xff]  ;;  %v81_v2 = vld [vmem:[%s698_s0 + $0x8] sm:$0xff]  ;;  %vm95_vm0 = vcmask 130048   ;;  %vm136_vm1 = vcmask 261120  }
   0xd   :  { %v80_v1 = vld [vmem:[%s698_s0] sm:$0xff]  ;;  %106 = vmatpush.bf16.msra.mxu0 %v406_v0  ;;  %v408_v4 = vld [vmem:[%s702_s4 + $0x8] sm:$0xff]  ;;  %vm224_vm2 = vcmask 1043456   ;;  %vm220_vm3 = vcmask 64512   ;;  %s540_s22 = smov 128   ;;  %s332_s26 = sshll.u32 %s712_s14, 4  ;;  %s333_s26 = int_to_ptr.hbm [resolvable:$true] %s332_s26 }
   0xe   :  { %v82_v3 = vpack.c.bf16 %v81_v2, %v80_v1  ;;  %146 = vmatpush.bf16.msra.mxu1 %v408_v4  ;;  %v407_v5 = vld [vmem:[%s702_s4] sm:$0xff]  ;;  %v410_v14 = vld [vmem:[%s704_s6 + $0x8] sm:$0xff]  ;;  %s541_s4 = smov 8  }
   0xf   :  { %v422_v7 = vld [vmem:[#allocation2] ss:$0 sm:$0xff]  ;;  %186 = vmatpush.bf16.msra.mxu2 %v410_v14  ;;  %v423_v17 = vld [vmem:[#allocation5] ss:$0 sm:$0xff]  ;;  %v412_v37 = vld [vmem:[%s708_s10 + $0x8] sm:$0xff] }
  0x10   :  { %368 = vmatmul.msk.bf16.vlgmr.msra.gmra.mxu0 %vm95_vm0, %v82_v3  ;;  %v409_v15 = vld [vmem:[%s704_s6] sm:$0xff]  ;;  %s538_s6 = smov 120   ;;  %v201_v40 = vld [vmem:[%s699_s1 + $0x8] sm:$0xff] }
  0x11   :  { %v424_v24 = vld [vmem:[%s705_s7] ss:$0 sm:$0xff]  ;;  %274 = vmatpush.bf16.msrb.mxu0 %v412_v37  ;;  %v414_v48 = vld [vmem:[%s710_s12 + $0x8] sm:$0xff] }
  0x12   :  { %147 = vmatpush.bf16.msra.mxu1 %v407_v5  ;;  %v215_v35 = vld [vmem:[%s706_s8] sm:$0xf] }
  0x13   :  { %187 = vmatpush.bf16.msra.mxu2 %v409_v15  ;;  %v226_v36 = vsel %vm224_vm2, %v215_v35, 0  ;;  %v200_v39 = vld [vmem:[%s699_s1] sm:$0xff] }
  0x14   :  { %235 = vmatpush.bf16.msra.mxu3 %v226_v36  ;;  %v411_v47 = vld [vmem:[%s708_s10] sm:$0xff] }
  0x15   :  { %275 = vmatpush.bf16.msrb.mxu0 %v411_v47  ;;  %v425_v50 = vld [vmem:[%s707_s9] ss:$0 sm:$0xff]  ;;  %s539_s9 = smov [#allocation8]  }
  0x16   :  { %v413_v57 = vld [vmem:[%s710_s12] sm:$0xff]  ;;  %s343_s0 = sshll.u32 %s539_s9, 4  ;;  %s345_s12 = sshll.u32 %s713_s15, 4  ;;  %s344_s0 = int_to_ptr.vmem [resolvable:$true] %s343_s0  ;;  %s346_s12 = int_to_ptr.hbm [resolvable:$true] %s345_s12 }
  0x17   :  { %v426_v59 = vld [vmem:[%s709_s11] ss:$0 sm:$0xff] }
  0x18   :  { %314 = vmatpush.bf16.msrb.mxu3 %v414_v48  ;;  %v427_v2 = vld [vmem:[%s711_s13] ss:$0 sm:$0xff] }
  0x1c   :  { %315 = vmatpush.bf16.msrb.mxu3 %v413_v57 }
  0x8d   :  { %v108_v6 = vpop.f32.mrf.mxu0 }
  0x8e   :  { %v109_v8 = vadd.f32 %v422_v7, %v108_v6 }
  0x90   :  { %v113_v11 = vmax.f32 %v109_v8, 0.0 }
  0x95   :  { %v110_v9 = vpop.f32.mrf.mxu0 }
  0x96   :  { %v111_v10 = vadd.f32 %v422_v7, %v110_v9 }
  0x98   :  { %v114_v12 = vmax.f32 %v111_v10, 0.0 }
  0x9a   :  { %v115_v13 = vpack.c.bf16 %v114_v12, %v113_v11 }
  0x9c   :  { %377 = vmatmul.msk.bf16.vlgmr.msra.gmra.mxu1 %vm136_vm1, %v115_v13 }
 0x119   :  { %v149_v16 = vpop.f32.mrf.mxu1 }
 0x11a   :  { %v150_v18 = vadd.f32 %v423_v17, %v149_v16 }
 0x11c   :  { %v154_v21 = vmax.f32 %v150_v18, 0.0 }
 0x121   :  { %v151_v19 = vpop.f32.mrf.mxu1 }
 0x122   :  { %v152_v20 = vadd.f32 %v423_v17, %v151_v19 }
 0x124   :  { %v155_v22 = vmax.f32 %v152_v20, 0.0 }
 0x126   :  { %v156_v23 = vpack.c.bf16 %v155_v22, %v154_v21 }
 0x128   :  { %386 = vmatmul.msk.bf16.vlgmr.msra.gmra.mxu2 %vm136_vm1, %v156_v23 }
 0x1ab   :  { %v189_v25 = vpop.f32.mrf.mxu2 }
 0x1ac   :  { %v190_v26 = vadd.f32 %v424_v24, %v189_v25 }
 0x1ae   :  { %v194_v27 = vmul.f32 0.5, %v190_v26  ;;  %324 = vst.msk [vmem:[#allocation8] sm:$0xff] %vm95_vm0, %v190_v26 }
 0x1b0   :  { %v196_v28 = vmul.f32 1.442695, %v194_v27 }
 0x1b2   :  { %428 = vpow2.f32 %v196_v28 }
 0x1b3   :  { %v191_v29 = vpop.f32.mrf.mxu2 }
 0x1b4   :  { %v192_v30 = vadd.f32 %v424_v24, %v191_v29 }
 0x1b6   :  { %v195_v31 = vmul.f32 0.5, %v192_v30  ;;  %325 = vst.msk [vmem:[#allocation8 + $0x8] sm:$0xff] %vm95_vm0, %v192_v30 }
 0x1b7   :  { %351 = dma.vmem_to_hbm [thread:$0]  %s344_s0, 256, %s346_s12, [#allocation9], %s540_s22, %s540_s22, %s541_s4  }
 0x1b8   :  { %v429_v32 = vpop.eup %428  ;;  %v198_v33 = vmul.f32 1.442695, %v195_v31 }
 0x1b9   :  { %204 = vrot.lane.b32.xlu0 %v429_v32, %s538_s6 }
 0x1ba   :  { %430 = vpow2.f32 %v198_v33 }
 0x1c0   :  { %v431_v34 = vpop.eup %430 }
 0x1c1   :  { %206 = vrot.lane.b32.xlu0 %v431_v34, %s538_s6  ;;  %s542_s6 = smov [#allocation7]  }
 0x1c2   :  { %s330_s7 = sshll.u32 %s542_s6, 4  ;;  %s331_s7 = int_to_ptr.vmem [resolvable:$true] %s330_s7 }
 0x22b   :  { %v205_v38 = vpop.permute.xlu0 %204 }
 0x22c   :  { %v210_v41 = vmul.f32 %v205_v38, %v200_v39 }
 0x22e   :  { %v212_v44 = vadd.f32 %v210_v41, %v190_v26 }
 0x233   :  { %v207_v42 = vpop.permute.xlu0 %206 }
 0x234   :  { %v211_v43 = vmul.f32 %v207_v42, %v201_v40 }
 0x236   :  { %v213_v45 = vadd.f32 %v211_v43, %v192_v30 }
 0x238   :  { %v214_v46 = vpack.c.bf16 %v213_v45, %v212_v44 }
 0x23a   :  { %387 = vmatmul.msk.bf16.vlgmr.msra.gmra.mxu3 %vm220_vm3, %v214_v46 }
 0x2bd   :  { %v237_v49 = vpop.f32.mrf.mxu3 }
 0x2be   :  { %v238_v51 = vadd.f32 %v425_v50, %v237_v49 }
 0x2c0   :  { %v242_v54 = vmax.f32 %v238_v51, 0.0 }
 0x2c5   :  { %v239_v52 = vpop.f32.mrf.mxu3 }
 0x2c6   :  { %v240_v53 = vadd.f32 %v425_v50, %v239_v52 }
 0x2c8   :  { %v243_v55 = vmax.f32 %v240_v53, 0.0 }
 0x2ca   :  { %v244_v56 = vpack.c.bf16 %v243_v55, %v242_v54 }
 0x2cc   :  { %396 = vmatmul.msk.bf16.vlgmr.msrb.gmra.mxu0 %vm136_vm1, %v244_v56 }
 0x349   :  { %v277_v58 = vpop.f32.mrf.mxu0 }
 0x34a   :  { %v278_v60 = vadd.f32 %v426_v59, %v277_v58 }
 0x34c   :  { %v282_v63 = vmax.f32 %v278_v60, 0.0 }
 0x351   :  { %v279_v61 = vpop.f32.mrf.mxu0 }
 0x352   :  { %v280_v62 = vadd.f32 %v426_v59, %v279_v61 }
 0x354   :  { %v283_v0 = vmax.f32 %v280_v62, 0.0 }
 0x356   :  { %v284_v1 = vpack.c.bf16 %v283_v0, %v282_v63 }
 0x358   :  { %405 = vmatmul.msk.bf16.vlgmr.msrb.gmra.mxu3 %vm136_vm1, %v284_v1 }
 0x3db   :  { %v317_v3 = vpop.f32.mrf.mxu3 }
 0x3dc   :  { %v318_v4 = vadd.f32 %v427_v2, %v317_v3 }
 0x3de   :  { %322 = vst.msk [vmem:[#allocation7] sm:$0xff] %vm95_vm0, %v318_v4 }
 0x3e3   :  { %v319_v5 = vpop.f32.mrf.mxu3 }
 0x3e4   :  { %v320_v6 = vadd.f32 %v427_v2, %v319_v5 }
 0x3e6   :  { %323 = vst.msk [vmem:[#allocation7 + $0x8] sm:$0xff] %vm95_vm0, %v320_v6 }
 0x3e7   :  { %338 = dma.vmem_to_hbm [thread:$0]  %s331_s7, 256, %s333_s26, [#allocation4], %s540_s22, %s540_s22, %s541_s4  }
 0x3e8   :  { %532 = dma.done.wait [#allocation4], 256  }
 0x3e9   :  { %533 = vsyncadd [#allocation4], 4294967040 }
 0x3ea   :  { %534 = dma.done.wait [#allocation9], 256  }
 0x3eb   :  { %535 = vsyncadd [#allocation9], 4294967040 }
 0x3ec   :  { %360 = vsyncpa [#allocation3], 1 }
 0x3ed   :  { %361 = vsyncpa [#allocation6], 1 }
 0x3ee   :  { %362 = vsyncpa [#allocation4], 1 }
 0x3ef   :  { %363 = vsyncpa [#allocation9], 1 }

</bundles_post_ra>
